<compile_context>
chip_gen: v6e
topology: v6e:2x2x1
jax: 0.10.0
libtpu: 0.0.40
codegen_flags: <defaults>
</compile_context>

<pallas_src>
import functools

import jax
import jax.numpy as jnp
from jax.experimental import pallas as pl
from jax.experimental.pallas import tpu as pltpu


def _bert_pooler_td_kernel(vdc_ref, hs_ref, w_ref, b_ref, o_ref):
    # hs: [tb, S, H] (full S, H per batch tile), vdc: [tb, S]
    hs = hs_ref[...].astype(jnp.float32)
    mask = (vdc_ref[...] == 1).astype(jnp.float32)          # [tb, S]

    # Masked mean over the sequence axis.
    t_num = jnp.sum(hs * mask[:, :, None], axis=1)          # [tb, H]
    cnt = jnp.sum(mask, axis=1, keepdims=True)              # [tb, 1]
    t_vec = t_num / cnt                                     # matches torch 0/0 -> nan

    cls = hs[:, 0, :]                                       # [tb, H]
    x = 0.5 * t_vec + 0.5 * cls                             # [tb, H], f32

    # Dense + tanh. Feed the MXU in the weight's dtype (bf16 by default),
    # accumulate in f32.
    y = jnp.dot(x.astype(w_ref.dtype), w_ref[...],
                preferred_element_type=jnp.float32)
    y = jnp.tanh(y + b_ref[...])
    o_ref[...] = y.astype(o_ref.dtype)


def _choose_tile_b(B, S, H, itemsize, vmem_budget_bytes=24 << 20):
    """Largest batch tile (multiple of 8 that divides B) whose double-buffered
    hidden_states tile stays inside the default scoped-VMEM budget."""
    per_row = 2 * S * H * itemsize + 2 * S * 4 + 2 * H * 4  # hs + vdc + out (dbl buf)
    max_rows = max(1, vmem_budget_bytes // per_row)
    if B <= max_rows:
        return B
    t = (max_rows // 8) * 8
    while t >= 8:
        if B % t == 0:
            return t
        t -= 8
    return B  # fallback: single block over the whole batch


def bert_pooler_td_forward(hidden_states, vdc_info, w, b, *,
                           matmul_dtype=jnp.bfloat16, tile_b=None):
    """hidden_states: [B, S, H]; vdc_info: [B, S] (ints, ==1 marks TD tokens);
       w: [H, H] laid out for x @ w (i.e. torch Linear.weight transposed);
       b: [H]."""
    B, S, H = hidden_states.shape
    assert vdc_info.shape == (B, S)

    if tile_b is None:
        tile_b = _choose_tile_b(B, S, H, jnp.dtype(hidden_states.dtype).itemsize)
    assert B % tile_b == 0, "B must be divisible by tile_b"
    grid = (B // tile_b,)

    vdc_i32 = vdc_info.astype(jnp.int32)
    w_k = w.astype(matmul_dtype)                 # resident MXU weight (bf16)
    b2d = b.reshape(1, H).astype(jnp.float32)

    out = pl.pallas_call(
        _bert_pooler_td_kernel,
        out_shape=jax.ShapeDtypeStruct((B, H), hidden_states.dtype),
        grid_spec=pltpu.PrefetchScalarGridSpec(
            num_scalar_prefetch=0,
            grid=grid,
            in_specs=[
                pl.BlockSpec((tile_b, S), lambda i: (i, 0)),        # VDC_info rows
                pl.BlockSpec((tile_b, S, H), lambda i: (i, 0, 0)),  # hidden_states
                pl.BlockSpec((H, H), lambda i: (0, 0)),             # dense weight (resident)
                pl.BlockSpec((1, H), lambda i: (0, 0)),             # dense bias
            ],
            out_specs=pl.BlockSpec((tile_b, H), lambda i: (i, 0)),
        ),
        compiler_params=pltpu.CompilerParams(
            dimension_semantics=("parallel",)),
    )(vdc_i32, hidden_states, w_k, b2d)
    return out


def _reference(hidden_states, vdc_info, w, b):
    mask = (vdc_info == 1).astype(hidden_states.dtype)[..., None]   # [B, S, 1]
    t = (hidden_states * mask).sum(axis=1) / mask.sum(axis=1)       # [B, H]
    x = 0.5 * t + 0.5 * hidden_states[:, 0]
    return jnp.tanh(x @ w + b)


if __name__ == "__main__":
    # Small BERT-ish config: batch=8, seq=16, hidden=32.
    B, S, H = 8, 16, 32
    key = jax.random.PRNGKey(0)
    k_hs, k_vdc, k_w, k_b = jax.random.split(key, 4)

    hidden_states = jax.random.normal(k_hs, (B, S, H), dtype=jnp.float32)

    # VDC_info with at least one "==1" token per row (well-formed input, avoids 0/0).
    vdc_info = jax.random.bernoulli(k_vdc, 0.4, (B, S)).astype(jnp.int32)
    vdc_info = vdc_info.at[:, 1].set(1)

    # torch Linear weight is [H_out, H_in]; we pass its transpose for x @ w.
    w = jax.random.normal(k_w, (H, H), dtype=jnp.float32) * 0.05
    b = jax.random.normal(k_b, (H,), dtype=jnp.float32) * 0.05

    out = bert_pooler_td_forward(hidden_states, vdc_info, w, b)
    out = jax.block_until_ready(out)

    ref = _reference(hidden_states, vdc_info, w, b)
    assert out.shape == (B, H)
    # bf16 matmul vs f32 reference -> loose tolerance; pooling/tanh are f32.
    assert jnp.allclose(out, ref, atol=3e-2, rtol=3e-2), "mismatch vs reference"

    print("KERNEL_OK")
</pallas_src>

<mosaic_0001>
module attributes {stable_mosaic.version = 11 : i64} {
  func.func @_bert_pooler_td_kernel(%arg0: i32, %arg1: memref<8x16xi32, #tpu.memory_space<vmem>>, %arg2: memref<8x16x32xf32, #tpu.memory_space<vmem>>, %arg3: memref<32x32xbf16, #tpu.memory_space<vmem>>, %arg4: memref<1x32xf32, #tpu.memory_space<vmem>>, %arg5: memref<8x32xf32, #tpu.memory_space<vmem>>) attributes {dimension_semantics = [#tpu.dimension_semantics<parallel>], iteration_bounds = array<i64: 1>, scalar_prefetch = 0 : i64, scratch_operands = 0 : i64, tpu.core_type = #tpu.core_type<tc>, window_params = [{transform_indices = @transform_0, window_bounds = array<i64: 8, 16>}, {transform_indices = @transform_1, window_bounds = array<i64: 8, 16, 32>}, {pipeline_mode = #tpu.pipeline_mode<synchronous>, transform_indices = @transform_2, window_bounds = array<i64: 32, 32>}, {pipeline_mode = #tpu.pipeline_mode<synchronous>, transform_indices = @transform_3, window_bounds = array<i64: 1, 32>}, {transform_indices = @transform_4, window_bounds = array<i64: 8, 32>}]} {
    %c0 = arith.constant 0 : index
    %c0_0 = arith.constant 0 : index
    %c0_1 = arith.constant 0 : index
    %0 = vector.load %arg2[%c0, %c0_0, %c0_1] : memref<8x16x32xf32, #tpu.memory_space<vmem>>, vector<8x16x32xf32>
    %c0_2 = arith.constant 0 : index
    %c0_3 = arith.constant 0 : index
    %1 = vector.load %arg1[%c0_2, %c0_3] : memref<8x16xi32, #tpu.memory_space<vmem>>, vector<8x16xi32>
    %c1_i32 = arith.constant 1 : i32
    %2 = vector.broadcast %c1_i32 : i32 to vector<8x16xi32>
    %3 = arith.cmpi eq, %1, %2 : vector<8x16xi32>
    %4 = arith.extui %3 : vector<8x16xi1> to vector<8x16xi32>
    %5 = arith.sitofp %4 : vector<8x16xi32> to vector<8x16xf32>
    %6 = vector.shape_cast %5 : vector<8x16xf32> to vector<8x16x1xf32>
    %7 = vector.broadcast %6 : vector<8x16x1xf32> to vector<8x16x32xf32>
    %8 = arith.mulf %0, %7 : vector<8x16x32xf32>
    %cst = arith.constant dense<0.000000e+00> : vector<8x32xf32>
    %9 = vector.multi_reduction <add>, %8, %cst [1] : vector<8x16x32xf32> to vector<8x32xf32>
    %cst_4 = arith.constant dense<0.000000e+00> : vector<8xf32>
    %10 = vector.multi_reduction <add>, %5, %cst_4 [1] : vector<8x16xf32> to vector<8xf32>
    %11 = vector.shape_cast %10 : vector<8xf32> to vector<8x1xf32>
    %12 = vector.broadcast %11 : vector<8x1xf32> to vector<8x32xf32>
    %13 = arith.divf %9, %12 : vector<8x32xf32>
    %14 = vector.extract_strided_slice %0 {offsets = [0, 0, 0], sizes = [8, 1, 32], strides = [1, 1, 1]} : vector<8x16x32xf32> to vector<8x1x32xf32>
    %15 = vector.shape_cast %14 : vector<8x1x32xf32> to vector<8x32xf32>
    %cst_5 = arith.constant 5.000000e-01 : f32
    %16 = vector.broadcast %cst_5 : f32 to vector<8x32xf32>
    %17 = arith.mulf %16, %13 : vector<8x32xf32>
    %cst_6 = arith.constant 5.000000e-01 : f32
    %18 = vector.broadcast %cst_6 : f32 to vector<8x32xf32>
    %19 = arith.mulf %18, %15 : vector<8x32xf32>
    %20 = arith.addf %17, %19 : vector<8x32xf32>
    %21 = arith.truncf %20 : vector<8x32xf32> to vector<8x32xbf16>
    %c0_7 = arith.constant 0 : index
    %c0_8 = arith.constant 0 : index
    %22 = vector.load %arg3[%c0_7, %c0_8] : memref<32x32xbf16, #tpu.memory_space<vmem>>, vector<32x32xbf16>
    %cst_9 = arith.constant dense<0.000000e+00> : vector<8x32xf32>
    %23 = tpu.matmul %21, %22, %cst_9 {dimension_numbers = #tpu.dot_dimension_numbers<[1], [0], [0], [1], [0, 0, 1, 1], [], []>} : vector<8x32xbf16>, vector<32x32xbf16>, vector<8x32xf32> -> vector<8x32xf32>
    %c0_10 = arith.constant 0 : index
    %c0_11 = arith.constant 0 : index
    %24 = vector.load %arg4[%c0_10, %c0_11] : memref<1x32xf32, #tpu.memory_space<vmem>>, vector<1x32xf32>
    %25 = vector.broadcast %24 : vector<1x32xf32> to vector<8x32xf32>
    %26 = arith.addf %23, %25 : vector<8x32xf32>
    %27 = math.tanh %26 : vector<8x32xf32>
    %c0_12 = arith.constant 0 : index
    %c0_13 = arith.constant 0 : index
    %28 = vector.load %arg5[%c0_12, %c0_13] : memref<8x32xf32, #tpu.memory_space<vmem>>, vector<8x32xf32>
    tpu.vector_store %arg5[%c0_12, %c0_13], %27 {strides = array<i32>} : memref<8x32xf32, #tpu.memory_space<vmem>>, vector<8x32xf32>,
    return
  }
  func.func @transform_0(%arg0: i32) -> (i32, i32) {
    %c0_i32 = arith.constant 0 : i32
    %c0_i32_0 = arith.constant 0 : i32
    return %arg0, %c0_i32 : i32, i32
  }
  func.func @transform_1(%arg0: i32) -> (i32, i32, i32) {
    %c0_i32 = arith.constant 0 : i32
    %c0_i32_0 = arith.constant 0 : i32
    %c0_i32_1 = arith.constant 0 : i32
    return %arg0, %c0_i32, %c0_i32_0 : i32, i32, i32
  }
  func.func @transform_2(%arg0: i32) -> (i32, i32) {
    %c0_i32 = arith.constant 0 : i32
    %c0_i32_0 = arith.constant 0 : i32
    %c0_i32_1 = arith.constant 0 : i32
    return %c0_i32, %c0_i32_0 : i32, i32
  }
  func.func @transform_3(%arg0: i32) -> (i32, i32) {
    %c0_i32 = arith.constant 0 : i32
    %c0_i32_0 = arith.constant 0 : i32
    %c0_i32_1 = arith.constant 0 : i32
    return %c0_i32, %c0_i32_0 : i32, i32
  }
  func.func @transform_4(%arg0: i32) -> (i32, i32) {
    %c0_i32 = arith.constant 0 : i32
    %c0_i32_0 = arith.constant 0 : i32
    return %arg0, %c0_i32 : i32, i32
  }
}

</mosaic_0001>

<bundles_post_ra>
// kernel: tpu_custom_call.1
= control target key start
LH: loop header
LB: loop body
LE: loop exit
PB: predicated region body
PF: predicated region fallthrough
CT: control target
= control target key end

     0   :  { %9 = vsyncpa [#allocation3], 0  ;;  %s687_s0 = inlined_call_operand.hbm [shape: s32[8,16], index: 0, kind: input, shape index: {}]   ;;  %s688_s1 = inlined_call_operand.hbm [shape: f32[8,16,32], index: 1, kind: input, shape index: {}]   ;;  %s689_s2 = inlined_call_operand.hbm [shape: bf16[32,32], index: 2, kind: input, shape index: {}]   ;;  %s690_s3 = inlined_call_operand.vmem [shape: f32[1,32], index: 3, kind: input, shape index: {}]   ;;  %s691_s4 = inlined_call_operand.hbm [shape: f32[8,32], index: 4, kind: output, shape index: {}]  }
   0x1   :  { %10 = vsyncpa [#allocation6], 0 }
   0x2   :  { %11 = vsyncpa [#allocation4], 0  ;;  %s577_s15 = smov [#allocation5]  }
   0x3   :  { %s27_s16 = sshll.u32 %s577_s15, 4  ;;  %s28_s16 = int_to_ptr.vmem [resolvable:$true] %s27_s16 }
   0x4   :  { %s499_s17 = scalar_lea.vmem %s28_s16, 2048  ;;  %p504_p1 = scmp.lt.s32.totalorder %s28_s16, %s28_s16 }
   0x5   :  { %p500_p0 = scmp.ne.s32.totalorder %s28_s16, %s499_s17  ;;  %p505_p2 = scmp.lt.s32.totalorder %s499_s17, %s499_s17 }
   0x7   :  { %p506_p3 = por %p505_p2, %p504_p1 }
   0x9   :  { %p507_p4 = pnand %p506_p3, %p500_p0 }
   0xb   :  { %510 = shalt.err (!%p507_p4)
}
   0xc   :  { %s578_s18 = smov 128   ;;  %s579_s19 = smov 8  }
   0xd   :  { %33 = dma.hbm_to_vmem [thread:$0]  %s688_s1, 2048, %s28_s16, [#allocation6], %s578_s18, %s578_s18, %s579_s19  }
   0xe   :  { %s580_s22 = smov [#allocation2]   ;;  %s581_s24 = smov [#allocation7]  }
   0xf   :  { %s18_s23 = sshll.u32 %s580_s22, 4  ;;  %s39_s25 = sshll.u32 %s581_s24, 4  ;;  %s19_s23 = int_to_ptr.vmem [resolvable:$true] %s18_s23  ;;  %s40_s25 = int_to_ptr.vmem [resolvable:$true] %s39_s25 }
  0x10   :  { %s519_s26 = scalar_lea.vmem %s19_s23, 128  ;;  %p524_p6 = scmp.lt.s32.totalorder %s19_s23, %s19_s23 }
  0x11   :  { %p520_p5 = scmp.ne.s32.totalorder %s19_s23, %s519_s26  ;;  %p525_p7 = scmp.lt.s32.totalorder %s519_s26, %s519_s26 }
  0x13   :  { %p526_p8 = por %p525_p7, %p524_p6 }
  0x15   :  { %p527_p9 = pnand %p526_p8, %p520_p5 }
  0x17   :  { %530 = shalt.err (!%p527_p9)
}
  0x18   :  { %21 = dma.hbm_to_vmem [thread:$0]  %s687_s0, 128, %s19_s23, [#allocation3]  }
  0x19   :  { %s539_s29 = scalar_lea.vmem %s40_s25, 256  ;;  %p544_p11 = scmp.lt.s32.totalorder %s40_s25, %s40_s25 }
  0x1a   :  { %p540_p10 = scmp.ne.s32.totalorder %s40_s25, %s539_s29  ;;  %p545_p12 = scmp.lt.s32.totalorder %s539_s29, %s539_s29 }
  0x1c   :  { %p546_p13 = por %p545_p12, %p544_p11 }
  0x1e   :  { %p547_p0 = pnand %p546_p13, %p540_p10 }
  0x20   :  { %550 = shalt.err (!%p547_p0)
}
  0x21   :  { %s582_s1 = smov 64   ;;  %s583_s30 = smov 4  }
  0x22   :  { %45 = dma.hbm_to_vmem [thread:$0]  %s689_s2, 256, %s40_s25, [#allocation6], %s582_s1, %s582_s1, %s583_s30  }
  0x23   :  { %571 = dma.done.wait [#allocation3], 128  }
  0x24   :  { %572 = vsyncadd [#allocation3], 4294967168 }
  0x25   :  { %573 = dma.done.wait [#allocation6], 2304  }
  0x26   :  { %574 = vsyncadd [#allocation6], 4294964992  ;;  %v78_v0 = vlaneseq  ;;  %v584_v1 = vmov 0.0   ;;  %v74_v4 = vld [vmem:[#allocation2] sm:$0xff]  ;;  %vm255_vm0 = vcmask 130048   ;;  %v471_v22 = vld [vmem:[#allocation7 + $0x8] sm:$0xff]  }
  0x27   :  { %453 = vmatprep.subr.bf16.mxu0 %v584_v1  ;;  %vm75_vm1 = vcmp.eq.s32.totalorder %v74_v4, 1  ;;  %vm585_vm2 = vmmov 0   ;;  %v472_v23 = vld [vmem:[#allocation7] sm:$0xff]   ;;  %v63_v26 = vld [vmem:[#allocation5 + $0x28] sm:$0xff]  ;;  %vm182_vm3 = vcmask 261120   ;;  %v61_v42 = vld [vmem:[#allocation5 + $0x18] sm:$0xff] }
  0x28   :  { %v79_v2 = vshrl.u32 %v78_v0, 7  ;;  %v445_v6 = vsel %vm75_vm1, 1.0, %v584_v1  ;;  %457 = vmatprep.mubr.msk.bf16.mxu0 %vm585_vm2, %v584_v1  ;;  %454 = vmatpush3.bf16.msra.mxu0 %v471_v22  ;;  %v621_v27 = vld [vmem:[#allocation5 + $0x20] sm:$0xff]  ;;  %v59_v34 = vld [vmem:[#allocation5 + $0x8] sm:$0xff]  ;;  %v631_v46 = vld [vmem:[#allocation5 + $0x30] sm:$0xff]  ;;  %vm351_vm4 = vcmask 1041409  }
  0x29   :  { %v256_v7 = vsel %vm255_vm0, %v445_v6, 0.0  ;;  %455 = vmatprep.subr.bf16.mxu0 %v584_v1  ;;  %v624_v32 = vld [vmem:[#allocation5] sm:$0xff]  ;;  %v65_v49 = vld [vmem:[#allocation5 + $0x38] sm:$0xff]  ;;  %v637_v55 = vld [vmem:[#allocation5 + $0x10] sm:$0xff]  ;;  %vm354_vm5 = vcmask 1042434   ;;  %vm357_vm6 = vcmask 1043459  }
  0x2a   :  { %v91_v3 = vsub.s32 1, %v79_v2  ;;  %v102_v5 = vsub.s32 2, %v79_v2  ;;  %257 = vadd.xlane.f32.xlu0 %v256_v7  ;;  %v80_v10 = vsub.s32 0, %v79_v2  ;;  %v113_v12 = vsub.s32 3, %v79_v2  ;;  %v67_v60 = vld [vmem:[#allocation5 + $0x48] sm:$0xff]  ;;  %v645_v4 = vld [vmem:[#allocation5 + $0x40] sm:$0xff] }
  0x2b   :  { %v124_v14 = vsub.s32 4, %v79_v2  ;;  %v135_v16 = vsub.s32 5, %v79_v2  ;;  %v146_v18 = vsub.s32 6, %v79_v2  ;;  %v157_v20 = vsub.s32 7, %v79_v2  ;;  %s586_s7 = smov [#allocation8]  }
  0x2c   :  { %v92_v8 = vrot.slane %v445_v6, %v91_v3  ;;  %v103_v9 = vrot.slane %v445_v6, %v102_v5  ;;  %v81_v11 = vrot.slane %v445_v6, %v80_v10  ;;  %v114_v13 = vrot.slane %v445_v6, %v113_v12  ;;  %456 = vmatpush3.bf16.msra.mxu0 %v472_v23  ;;  %s435_s8 = sshll.u32 %s586_s7, 4  ;;  %s436_s8 = int_to_ptr.vmem [resolvable:$true] %s435_s8 }
  0x2d   :  { %v125_v15 = vrot.slane %v445_v6, %v124_v14  ;;  %v136_v17 = vrot.slane %v445_v6, %v135_v16  ;;  %v147_v19 = vrot.slane %v445_v6, %v146_v18  ;;  %v158_v21 = vrot.slane %v445_v6, %v157_v20  ;;  %v653_v20 = vld [vmem:[#allocation5 + $0x50] sm:$0xff]  ;;  %s551_s9 = scalar_lea.vmem %s436_s8, 128  ;;  %p556_p2 = scmp.lt.s32.totalorder %s436_s8, %s436_s8 }
  0x2e   :  { %98 = vbcast.lane.b32.xlu1 %v92_v8, 264  ;;  %vm360_vm7 = vcmask 1044484   ;;  %vm363_vm8 = vcmask 1045509   ;;  %vm366_vm9 = vcmask 1046534   ;;  %vm369_vm10 = vcmask 1047559   ;;  %p552_p1 = scmp.ne.s32.totalorder %s436_s8, %s551_s9  ;;  %p557_p3 = scmp.lt.s32.totalorder %s551_s9, %s551_s9 }
  0x30   :  { %p558_p4 = por %p557_p3, %p556_p2 }
  0x32   :  { %105 = vbcast.lane.b32.xlu1 %v103_v9, 256  ;;  %p559_p5 = pnand %p558_p4, %p552_p1 }
  0x36   :  { %109 = vbcast.lane.b32.xlu1 %v103_v9, 264 }
  0x3a   :  { %83 = vbcast.lane.b32.xlu1 %v81_v11, 256 }
  0x3e   :  { %87 = vbcast.lane.b32.xlu1 %v81_v11, 264 }
  0x40   :  { %94 = vbcast.lane.b32.xlu0 %v92_v8, 256 }
  0x42   :  { %116 = vbcast.lane.b32.xlu1 %v114_v13, 256 }
  0x44   :  { %127 = vbcast.lane.b32.xlu0 %v125_v15, 256 }
  0x46   :  { %120 = vbcast.lane.b32.xlu1 %v114_v13, 264  ;;  %v69_v13 = vld [vmem:[#allocation5 + $0x58] sm:$0xff] }
  0x48   :  { %138 = vbcast.lane.b32.xlu0 %v136_v17, 256 }
  0x4a   :  { %131 = vbcast.lane.b32.xlu1 %v125_v15, 264 }
  0x4c   :  { %149 = vbcast.lane.b32.xlu0 %v147_v19, 256 }
  0x4e   :  { %142 = vbcast.lane.b32.xlu1 %v136_v17, 264 }
  0x50   :  { %160 = vbcast.lane.b32.xlu0 %v158_v21, 256 }
  0x52   :  { %153 = vbcast.lane.b32.xlu1 %v147_v19, 264 }
  0x56   :  { %164 = vbcast.lane.b32.xlu1 %v158_v21, 264 }
  0xa0   :  { %v99_v24 = vpop.permute.xlu1 %98 }
  0xa1   :  { %v169_v50 = vmul.f32 %v99_v24, %v61_v42 }
  0xa3   :  { %v193_v61 = vsel %vm182_vm3, %v169_v50, 0.0 }
  0xa4   :  { %v106_v25 = vpop.permute.xlu1 %105 }
  0xa5   :  { %v170_v30 = vmul.f32 %v106_v25, %v621_v27 }
  0xa7   :  { %v201_v35 = vsel %vm182_vm3, %v170_v30, 0.0  ;;  %v71_v30 = vld [vmem:[#allocation5 + $0x68] sm:$0xff] }
  0xa8   :  { %v110_v28 = vpop.permute.xlu1 %109 }
  0xa9   :  { %v171_v29 = vmul.f32 %v110_v28, %v63_v26 }
  0xab   :  { %v202_v33 = vsel %vm182_vm3, %v171_v29, 0.0 }
  0xac   :  { %v84_v31 = vpop.permute.xlu1 %83  ;;  %v203_v37 = vadd.f32 %v202_v33, %v201_v35 }
  0xad   :  { %v166_v36 = vmul.f32 %v84_v31, %v624_v32 }
  0xae   :  { %v204_v43 = vrot.slane %v203_v37, 4 }
  0xaf   :  { %v183_v40 = vsel %vm182_vm3, %v166_v36, 0.0 }
  0xb0   :  { %v88_v38 = vpop.permute.xlu1 %87  ;;  %v205_v52 = vadd.f32 %v204_v43, %v203_v37 }
  0xb1   :  { %v167_v39 = vmul.f32 %v88_v38, %v59_v34  ;;  %v658_v38 = vld [vmem:[#allocation5 + $0x60] sm:$0xff] }
  0xb2   :  { %v206_v1 = vrot.slane %v205_v52, 2 }
  0xb3   :  { %v184_v41 = vsel %vm182_vm3, %v167_v39, 0.0  ;;  %v633_v48 = vpop.xlane.xlu0 %257 }
  0xb4   :  { %v185_v44 = vadd.f32 %v184_v41, %v183_v40  ;;  %v117_v45 = vpop.permute.xlu1 %116  ;;  %v261_v53 = vrot.slane %v633_v48, 2  ;;  %v260_v58 = vrot.slane %v633_v48, 1  ;;  %v262_v2 = vrot.slane %v633_v48, 3 }
  0xb5   :  { %v172_v51 = vmul.f32 %v117_v45, %v631_v46  ;;  %v263_v9 = vrot.slane %v633_v48, 4  ;;  %v207_v16 = vadd.f32 %v206_v1, %v205_v52  ;;  %v264_v17 = vrot.slane %v633_v48, 5 }
  0xb6   :  { %v186_v47 = vrot.slane %v185_v44, 4  ;;  %473 = vrcp.f32 %v261_v53  ;;  %v265_v41 = vrot.slane %v633_v48, 6 }
  0xb7   :  { %v95_v59 = vpop.permute.xlu0 %94  ;;  %v210_v62 = vsel %vm182_vm3, %v172_v51, 0.0  ;;  %475 = vrcp.f32 %v633_v48  ;;  %v208_v34 = vrot.slane %v207_v16, 1 }
  0xb8   :  { %v121_v54 = vpop.permute.xlu1 %120  ;;  %v187_v56 = vadd.f32 %v186_v47, %v185_v44  ;;  %v168_v0 = vmul.f32 %v95_v59, %v637_v55  ;;  %477 = vrcp.f32 %v260_v58  ;;  %v73_v59 = vld [vmem:[#allocation5 + $0x78] sm:$0xff] }
  0xb9   :  { %v173_v57 = vmul.f32 %v121_v54, %v65_v49  ;;  %479 = vrcp.f32 %v262_v2 }
  0xba   :  { %v188_v6 = vrot.slane %v187_v56, 2  ;;  %v192_v7 = vsel %vm182_vm3, %v168_v0, 0.0  ;;  %481 = vrcp.f32 %v263_v9 }
  0xbb   :  { %v211_v63 = vsel %vm182_vm3, %v173_v57, 0.0  ;;  %v194_v11 = vadd.f32 %v193_v61, %v192_v7  ;;  %v128_v12 = vpop.permute.xlu0 %127  ;;  %483 = vrcp.f32 %v264_v17  ;;  %v664_v57 = vld [vmem:[#allocation5 + $0x70] sm:$0xff]  ;;  %v209_v61 = vadd.f32 %v208_v34, %v207_v16 }
  0xbc   :  { %v212_v3 = vadd.f32 %v211_v63, %v210_v62  ;;  %v132_v5 = vpop.permute.xlu1 %131  ;;  %v174_v14 = vmul.f32 %v128_v12, %v645_v4  ;;  %v189_v22 = vadd.f32 %v188_v6, %v187_v56  ;;  %485 = vrcp.f32 %v265_v41 }
  0xbd   :  { %v175_v8 = vmul.f32 %v132_v5, %v67_v60  ;;  %v195_v19 = vrot.slane %v194_v11, 4  ;;  %v300_v62 = vmul.f32 0.5, %v637_v55  ;;  %v301_v55 = vmul.f32 0.5, %v621_v27 }
  0xbe   :  { %v213_v10 = vrot.slane %v212_v3, 4  ;;  %v219_v23 = vsel %vm182_vm3, %v174_v14, 0.0  ;;  %v190_v40 = vrot.slane %v189_v22, 1  ;;  %v266_v16 = vrot.slane %v633_v48, 7 }
  0xbf   :  { %v220_v15 = vsel %vm182_vm3, %v175_v8, 0.0  ;;  %v196_v26 = vadd.f32 %v195_v19, %v194_v11  ;;  %v139_v29 = vpop.permute.xlu0 %138 }
  0xc0   :  { %v214_v18 = vadd.f32 %v213_v10, %v212_v3  ;;  %v143_v21 = vpop.permute.xlu1 %142  ;;  %v221_v28 = vadd.f32 %v220_v15, %v219_v23  ;;  %v176_v31 = vmul.f32 %v139_v29, %v653_v20  ;;  %v191_v1 = vadd.f32 %v190_v40, %v189_v22 }
  0xc1   :  { %v177_v24 = vmul.f32 %v143_v21, %v69_v13  ;;  %v197_v36 = vrot.slane %v196_v26, 2  ;;  %487 = vrcp.f32 %v266_v16 }
  0xc2   :  { %v215_v25 = vrot.slane %v214_v18, 2  ;;  %v222_v37 = vrot.slane %v221_v28, 4  ;;  %v228_v42 = vsel %vm182_vm3, %v176_v31, 0.0 }
  0xc3   :  { %v229_v33 = vsel %vm182_vm3, %v177_v24, 0.0  ;;  %v198_v44 = vadd.f32 %v197_v36, %v196_v26  ;;  %v150_v49 = vpop.permute.xlu0 %149  ;;  %v474_v60 = vpop.eup %473  ;;  %v299_v26 = vmul.f32 0.5, %v624_v32 }
  0xc4   :  { %v216_v35 = vadd.f32 %v215_v25, %v214_v18  ;;  %v154_v39 = vpop.permute.xlu1 %153  ;;  %v223_v45 = vadd.f32 %v222_v37, %v221_v28  ;;  %v230_v47 = vadd.f32 %v229_v33, %v228_v42  ;;  %v178_v51 = vmul.f32 %v150_v49, %v658_v38  ;;  %v476_v0 = vpop.eup %475 }
  0xc5   :  { %v179_v43 = vmul.f32 %v154_v39, %v71_v30  ;;  %v199_v52 = vrot.slane %v198_v44, 1  ;;  %v478_v7 = vpop.eup %477  ;;  %v280_v13 = vmul.f32 %v474_v60, %v209_v61  ;;  %v276_v17 = vmul.f32 %v476_v0, %v191_v1 }
  0xc6   :  { %v217_v50 = vrot.slane %v216_v35, 1  ;;  %v224_v53 = vrot.slane %v223_v45, 2  ;;  %v231_v54 = vrot.slane %v230_v47, 4  ;;  %v237_v63 = vsel %vm182_vm3, %v178_v51, 0.0  ;;  %v480_v19 = vpop.eup %479 }
  0xc7   :  { %v238_v56 = vsel %vm182_vm3, %v179_v43, 0.0  ;;  %v200_v2 = vadd.f32 %v199_v52, %v198_v44  ;;  %v161_v6 = vpop.permute.xlu0 %160  ;;  %v482_v25 = vpop.eup %481  ;;  %v293_v31 = vmul.f32 0.5, %v280_v13  ;;  %v291_v48 = vmul.f32 0.5, %v276_v17 }
  0xc8   :  { %v165_v58 = vpop.permute.xlu1 %164  ;;  %v225_v3 = vadd.f32 %v224_v53, %v223_v45  ;;  %v232_v5 = vadd.f32 %v231_v54, %v230_v47  ;;  %v218_v8 = vadd.f32 %v217_v50, %v216_v35  ;;  %v239_v9 = vadd.f32 %v238_v56, %v237_v63  ;;  %v484_v40 = vpop.eup %483 }
  0xc9   :  { %v180_v10 = vmul.f32 %v161_v6, %v664_v57  ;;  %v181_v11 = vmul.f32 %v165_v58, %v73_v59  ;;  %v278_v12 = vmul.f32 %v478_v7, %v200_v2  ;;  %v302_v37 = vmul.f32 0.5, %v631_v46  ;;  %v486_v54 = vpop.eup %485 }
  0xca   :  { %v226_v14 = vrot.slane %v225_v3, 1  ;;  %v233_v15 = vrot.slane %v232_v5, 2  ;;  %v240_v18 = vrot.slane %v239_v9, 4  ;;  %v282_v28 = vmul.f32 %v480_v19, %v218_v8 }
  0xcb   :  { %v292_v21 = vmul.f32 0.5, %v278_v12  ;;  %v246_v24 = vsel %vm182_vm3, %v180_v10, 0.0  ;;  %v247_v30 = vsel %vm182_vm3, %v181_v11, 0.0  ;;  %v309_v44 = vadd.f32 %v301_v55, %v293_v31 }
  0xcc   :  { %v227_v22 = vadd.f32 %v226_v14, %v225_v3  ;;  %v234_v23 = vadd.f32 %v233_v15, %v232_v5  ;;  %v241_v29 = vadd.f32 %v240_v18, %v239_v9  ;;  %v248_v36 = vadd.f32 %v247_v30, %v246_v24 }
  0xcd   :  { %v308_v33 = vadd.f32 %v300_v62, %v292_v21  ;;  %v294_v41 = vmul.f32 0.5, %v282_v28  ;;  %v303_v45 = vmul.f32 0.5, %v645_v4  ;;  %v307_v50 = vadd.f32 %v299_v26, %v291_v48 }
  0xce   :  { %v284_v27 = vmul.f32 %v482_v25, %v227_v22  ;;  %v235_v34 = vrot.slane %v234_v23, 1  ;;  %v242_v35 = vrot.slane %v241_v29, 2  ;;  %v249_v32 = vrot.slane %v248_v36, 4  ;;  %v488_v13 = vpop.eup %487 }
  0xcf   :  { %v316_v42 = vpack.c.bf16 %v308_v33, %v308_v33  ;;  %v304_v51 = vmul.f32 0.5, %v653_v20  ;;  %v310_v58 = vadd.f32 %v302_v37, %v294_v41  ;;  %v317_v61 = vpack.c.bf16 %v309_v44, %v309_v44  ;;  %v446_v37 = vld [vmem:[%s690_s3] ss:$0 sm:$0xff] }
  0xd0   :  { %v236_v39 = vadd.f32 %v235_v34, %v234_v23  ;;  %v243_v43 = vadd.f32 %v242_v35, %v241_v29  ;;  %v295_v47 = vmul.f32 0.5, %v284_v27  ;;  %v250_v53 = vadd.f32 %v249_v32, %v248_v36 }
  0xd1   :  { %v343_v46 = vunpack.c.l.b16 %v316_v42  ;;  %v305_v63 = vmul.f32 0.5, %v658_v38  ;;  %v315_v0 = vpack.c.bf16 %v307_v50, %v307_v50  ;;  %v318_v3 = vpack.c.bf16 %v310_v58, %v310_v58 }
  0xd2   :  { %v286_v49 = vmul.f32 %v484_v40, %v236_v39  ;;  %v244_v52 = vrot.slane %v243_v43, 1  ;;  %v251_v60 = vrot.slane %v250_v53, 2  ;;  %v311_v62 = vadd.f32 %v303_v45, %v295_v47 }
  0xd3   :  { %v350_v5 = vrot.slane %v343_v46, 7  ;;  %v344_v7 = vunpack.c.l.b16 %v317_v61  ;;  %v342_v9 = vunpack.c.l.b16 %v315_v0  ;;  %v306_v14 = vmul.f32 0.5, %v664_v57 }
  0xd4   :  { %v296_v56 = vmul.f32 0.5, %v286_v49  ;;  %v245_v59 = vadd.f32 %v244_v52, %v243_v43  ;;  %v252_v2 = vadd.f32 %v251_v60, %v250_v53  ;;  %v319_v8 = vpack.c.bf16 %v311_v62, %v311_v62 }
  0xd5   :  { %v345_v38 = vunpack.c.l.b16 %v318_v3  ;;  %v352_v15 = vsel %vm351_vm4, %v350_v5, %v342_v9  ;;  %v353_v17 = vrot.slane %v344_v7, 6 }
  0xd6   :  { %v312_v1 = vadd.f32 %v304_v51, %v296_v56  ;;  %v288_v4 = vmul.f32 %v486_v54, %v245_v59  ;;  %v253_v20 = vrot.slane %v252_v2, 1  ;;  %v346_v18 = vunpack.c.l.b16 %v319_v8 }
  0xd7   :  { %v355_v22 = vsel %vm354_vm5, %v353_v17, %v352_v15  ;;  %v356_v24 = vrot.slane %v345_v38, 5 }
  0xd8   :  { %v297_v6 = vmul.f32 0.5, %v288_v4  ;;  %v320_v10 = vpack.c.bf16 %v312_v1, %v312_v1  ;;  %v254_v12 = vadd.f32 %v253_v20, %v252_v2  ;;  %v359_v26 = vrot.slane %v346_v18, 4 }
  0xd9   :  { %v358_v28 = vsel %vm357_vm6, %v356_v24, %v355_v22 }
  0xda   :  { %v313_v11 = vadd.f32 %v305_v63, %v297_v6  ;;  %v290_v16 = vmul.f32 %v488_v13, %v254_v12  ;;  %v347_v19 = vunpack.c.l.b16 %v320_v10  ;;  %v361_v33 = vsel %vm360_vm7, %v359_v26, %v358_v28 }
  0xdc   :  { %v321_v55 = vpack.c.bf16 %v313_v11, %v313_v11  ;;  %v298_v21 = vmul.f32 0.5, %v290_v16  ;;  %v362_v29 = vrot.slane %v347_v19, 3 }
  0xde   :  { %v348_v23 = vunpack.c.l.b16 %v321_v55  ;;  %v314_v25 = vadd.f32 %v306_v14, %v298_v21  ;;  %v364_v27 = vsel %vm363_vm8, %v362_v29, %v361_v33 }
  0xe0   :  { %v322_v30 = vpack.c.bf16 %v314_v25, %v314_v25  ;;  %v365_v57 = vrot.slane %v348_v23, 2 }
  0xe2   :  { %v349_v31 = vunpack.c.l.b16 %v322_v30  ;;  %v367_v48 = vsel %vm366_vm9, %v365_v57, %v364_v27 }
  0xe4   :  { %v368_v34 = vrot.slane %v349_v31, 1 }
  0xe6   :  { %v370_v35 = vsel %vm369_vm10, %v368_v34, %v367_v48 }
  0xe7   :  { %v371_v36 = vpack.c.b16 %v370_v35, %v370_v35 }
  0xe9   :  { %458 = vmatmul.mubr.msk.bf16.vlgmr.msra.gmra.mxu0 %vm182_vm3, %v371_v36 }
 0x1a9   :  { %v421_v39 = vpop.f32.mrf.mxu0 }
 0x1aa   :  { %v422_v40 = vadd.f32 %v446_v37, %v421_v39 }
 0x1ab   :  { %v459_v41 = vpop.f32.mrf.mxu0 }
 0x1ac   :  { %489 = vtanh.f32 %v422_v40 }
 0x1ad   :  { %v424_v42 = vpop.f32.mrf.mxu0 }
 0x1af   :  { %v460_v43 = vpop.f32.mrf.mxu0 }
 0x1b9   :  { %v490_v32 = vpop.eup %489 }
 0x1ba   :  { %428 = vst.msk [vmem:[#allocation8] sm:$0xff] %vm182_vm3, %v490_v32 }
 0x1bb   :  { %562 = shalt.err (!%p559_p5)
}
 0x1bc   :  { %438 = dma.vmem_to_hbm [thread:$0]  %s436_s8, 128, %s691_s4, [#allocation4]  }
 0x1bd   :  { %575 = dma.done.wait [#allocation4], 128  }
 0x1be   :  { %576 = vsyncadd [#allocation4], 4294967168 }
 0x1bf   :  { %442 = vsyncpa [#allocation3], 1 }
 0x1c0   :  { %443 = vsyncpa [#allocation6], 1 }
 0x1c1   :  { %444 = vsyncpa [#allocation4], 1 }

</bundles_post_ra>
